<compile_context>
chip_gen: v5e
topology: v5e:2x2
jax: 0.10.0
libtpu: 0.0.40
codegen_flags: <defaults>
</compile_context>

<pallas_src>
import jax
import jax.numpy as jnp
from jax.experimental import pallas as pl
from jax.experimental.pallas import tpu as pltpu


LOG_STD_MIN = -20.0
LOG_STD_MAX = 1.0
LANE = 128  # TPU lane width; head output is padded to 2*LANE columns.


def _actor_kernel(x_ref,
                  w1_ref, b1_ref,
                  w2_ref, b2_ref,
                  w3_ref, b3_ref,
                  wh_ref, bh_ref,
                  mu_ref, diag_ref):
    # x is already matmul dtype (bf16); accumulate in f32 on the MXU.
    x = x_ref[...]

    h = jnp.dot(x, w1_ref[...], preferred_element_type=jnp.float32) + b1_ref[...]
    h = jnp.maximum(h, 0.0)

    h = jnp.dot(h.astype(w2_ref.dtype), w2_ref[...],
                preferred_element_type=jnp.float32) + b2_ref[...]
    h = jnp.maximum(h, 0.0)

    h = jnp.dot(h.astype(w3_ref.dtype), w3_ref[...],
                preferred_element_type=jnp.float32) + b3_ref[...]
    h = jnp.maximum(h, 0.0)

    # Fused heads: columns [0:out] are mu, columns [LANE:LANE+out] are log_std,
    # the rest are zero padding (lane-dense 2*LANE wide result).
    z = jnp.dot(h.astype(wh_ref.dtype), wh_ref[...],
                preferred_element_type=jnp.float32) + bh_ref[...]
    t = jnp.tanh(z)                                   # (TB, 2*LANE), f32

    # mu slab: first 128 lanes (aligned slice -> no relayout, unmasked store).
    mu_ref[...] = t[:, :LANE].astype(mu_ref.dtype)

    # covar diagonal slab from the second 128 lanes.
    log_std = t[:, LANE:]
    diag_ref[...] = jnp.exp(
        2.0 * (LOG_STD_MIN + 0.5 * (LOG_STD_MAX - LOG_STD_MIN) * (log_std + 1.0))
    ).astype(diag_ref.dtype)


def _linear_params(key, fan_in, fan_out):
    # PyTorch nn.Linear default init: U(-1/sqrt(fan_in), 1/sqrt(fan_in)).
    kw, kb = jax.random.split(key)
    bound = 1.0 / jnp.sqrt(float(fan_in))
    # stored as (in, out) so the kernel does x @ W
    w = jax.random.uniform(kw, (fan_in, fan_out), jnp.float32, -bound, bound)
    b = jax.random.uniform(kb, (fan_out,), jnp.float32, -bound, bound)
    return w, b


def init_actor_params(key, input_size, output_size, hidden_size):
    keys = jax.random.split(key, 5)
    w1, b1 = _linear_params(keys[0], input_size, hidden_size)
    w2, b2 = _linear_params(keys[1], hidden_size, hidden_size // 2)
    w3, b3 = _linear_params(keys[2], hidden_size // 2, hidden_size // 4)
    wmu, bmu = _linear_params(keys[3], hidden_size // 4, output_size)
    wls, bls = _linear_params(keys[4], hidden_size // 4, output_size)
    return (w1, b1, w2, b2, w3, b3, wmu, bmu, wls, bls)


def actor_net_forward(x, params, *, tb=128, matmul_dtype=jnp.bfloat16):
    """Forward pass. Returns (mu (B, out), covar (B, out, out))."""
    (w1, b1, w2, b2, w3, b3, wmu, bmu, wls, bls) = params
    batch, in_size = x.shape
    out_size = wmu.shape[1]
    h3 = w3.shape[1]

    # ---- wrapper-side param packing -------------------------------------
    # Fuse the two heads and pad to a lane-dense (h3, 2*LANE) matrix:
    #   columns [0:out]            -> mu head
    #   columns [LANE:LANE+out]    -> log_std head
    wh = jnp.zeros((h3, 2 * LANE), jnp.float32)
    wh = wh.at[:, :out_size].set(wmu).at[:, LANE:LANE + out_size].set(wls)
    bh = jnp.zeros((1, 2 * LANE), jnp.float32)
    bh = bh.at[0, :out_size].set(bmu).at[0, LANE:LANE + out_size].set(bls)

    # Matmul inputs in bf16 (MXU-native), biases stay f32 (added post-matmul).
    w1c = w1.astype(matmul_dtype)
    w2c = w2.astype(matmul_dtype)
    w3c = w3.astype(matmul_dtype)
    whc = wh.astype(matmul_dtype)
    b1r = b1.reshape(1, -1)
    b2r = b2.reshape(1, -1)
    b3r = b3.reshape(1, -1)

    # Pad batch up to a multiple of the batch tile so the grid divides evenly.
    padded = ((batch + tb - 1) // tb) * tb
    xp = jnp.zeros((padded, in_size), matmul_dtype).at[:batch].set(
        x.astype(matmul_dtype))

    grid = (padded // tb,)

    def resident(shape):
        nd = len(shape)
        return pl.BlockSpec(shape, lambda i, _nd=nd: (0,) * _nd)

    mu_pad, diag_pad = pl.pallas_call(
        _actor_kernel,
        grid=grid,
        out_shape=(
            jax.ShapeDtypeStruct((padded, LANE), jnp.float32),
            jax.ShapeDtypeStruct((padded, LANE), jnp.float32),
        ),
        in_specs=[
            pl.BlockSpec((tb, in_size), lambda i: (i, 0)),   # x: tiled on batch
            resident(w1c.shape), resident(b1r.shape),        # weights resident
            resident(w2c.shape), resident(b2r.shape),
            resident(w3c.shape), resident(b3r.shape),
            resident(whc.shape), resident(bh.shape),
        ],
        out_specs=(
            pl.BlockSpec((tb, LANE), lambda i: (i, 0)),
            pl.BlockSpec((tb, LANE), lambda i: (i, 0)),
        ),
        compiler_params=pltpu.CompilerParams(
            dimension_semantics=("parallel",)),  # batch shards over v7x TCs
    )(xp, w1c, b1r, w2c, b2r, w3c, b3r, whc, bh)

    # Slice away batch + lane padding; build the diagonal covariance with XLA.
    mu = mu_pad[:batch, :out_size]
    covar_diag = diag_pad[:batch, :out_size]
    covar = covar_diag[:, :, None] * jnp.eye(out_size, dtype=covar_diag.dtype)
    return mu, covar


def _reference_forward(x, params, matmul_dtype=jnp.bfloat16):
    # Pure-JAX reference mirroring the PyTorch forward with the same bf16-in /
    # f32-accumulate matmul convention as the kernel.
    (w1, b1, w2, b2, w3, b3, wmu, bmu, wls, bls) = params

    def mm(a, w):
        return jnp.dot(a.astype(matmul_dtype), w.astype(matmul_dtype),
                       preferred_element_type=jnp.float32)

    h = jnp.maximum(mm(x, w1) + b1, 0.0)
    h = jnp.maximum(mm(h, w2) + b2, 0.0)
    h = jnp.maximum(mm(h, w3) + b3, 0.0)
    mu = jnp.tanh(mm(h, wmu) + bmu)
    log_std = jnp.tanh(mm(h, wls) + bls)
    covar_diag = jnp.exp(
        2.0 * (LOG_STD_MIN + 0.5 * (LOG_STD_MAX - LOG_STD_MIN) * (log_std + 1.0)))
    covar = covar_diag[:, :, None] * jnp.eye(covar_diag.shape[1],
                                             dtype=covar_diag.dtype)
    return mu, covar


if __name__ == "__main__":
    input_size = 16
    output_size = 4
    hidden_size = 32
    batch = 2

    key = jax.random.PRNGKey(0)
    k_params, k_x = jax.random.split(key)
    params = init_actor_params(k_params, input_size, output_size, hidden_size)
    x = jax.random.normal(k_x, (batch, input_size), jnp.float32)

    mu, covar = actor_net_forward(x, params)
    jax.block_until_ready((mu, covar))

    mu_ref, covar_ref = _reference_forward(x, params)
    assert mu.shape == (batch, output_size)
    assert covar.shape == (batch, output_size, output_size)
    assert jnp.allclose(mu, mu_ref, atol=1e-5, rtol=1e-5)
    assert jnp.allclose(covar, covar_ref, rtol=1e-3, atol=1e-12)

    print("KERNEL_OK")
</pallas_src>

<mosaic_0001>
module attributes {stable_mosaic.version = 11 : i64} {
  func.func @_actor_kernel(%arg0: i32, %arg1: memref<128x16xbf16, #tpu.memory_space<vmem>>, %arg2: memref<16x32xbf16, #tpu.memory_space<vmem>>, %arg3: memref<1x32xf32, #tpu.memory_space<vmem>>, %arg4: memref<32x16xbf16, #tpu.memory_space<vmem>>, %arg5: memref<1x16xf32, #tpu.memory_space<vmem>>, %arg6: memref<16x8xbf16, #tpu.memory_space<vmem>>, %arg7: memref<1x8xf32, #tpu.memory_space<vmem>>, %arg8: memref<8x256xbf16, #tpu.memory_space<vmem>>, %arg9: memref<1x256xf32, #tpu.memory_space<vmem>>, %arg10: memref<128x128xf32, #tpu.memory_space<vmem>>, %arg11: memref<128x128xf32, #tpu.memory_space<vmem>>) attributes {dimension_semantics = [#tpu.dimension_semantics<parallel>], iteration_bounds = array<i64: 1>, scalar_prefetch = 0 : i64, scratch_operands = 0 : i64, tpu.core_type = #tpu.core_type<tc>, window_params = [{transform_indices = @transform_0, window_bounds = array<i64: 128, 16>}, {pipeline_mode = #tpu.pipeline_mode<synchronous>, transform_indices = @transform_1, window_bounds = array<i64: 16, 32>}, {pipeline_mode = #tpu.pipeline_mode<synchronous>, transform_indices = @transform_2, window_bounds = array<i64: 1, 32>}, {pipeline_mode = #tpu.pipeline_mode<synchronous>, transform_indices = @transform_3, window_bounds = array<i64: 32, 16>}, {pipeline_mode = #tpu.pipeline_mode<synchronous>, transform_indices = @transform_4, window_bounds = array<i64: 1, 16>}, {pipeline_mode = #tpu.pipeline_mode<synchronous>, transform_indices = @transform_5, window_bounds = array<i64: 16, 8>}, {pipeline_mode = #tpu.pipeline_mode<synchronous>, transform_indices = @transform_6, window_bounds = array<i64: 1, 8>}, {pipeline_mode = #tpu.pipeline_mode<synchronous>, transform_indices = @transform_7, window_bounds = array<i64: 8, 256>}, {pipeline_mode = #tpu.pipeline_mode<synchronous>, transform_indices = @transform_8, window_bounds = array<i64: 1, 256>}, {transform_indices = @transform_9, window_bounds = array<i64: 128, 128>}, {transform_indices = @transform_10, window_bounds = array<i64: 128, 128>}]} {
    %c0 = arith.constant 0 : index
    %c0_0 = arith.constant 0 : index
    %0 = vector.load %arg1[%c0, %c0_0] : memref<128x16xbf16, #tpu.memory_space<vmem>>, vector<128x16xbf16>
    %c0_1 = arith.constant 0 : index
    %c0_2 = arith.constant 0 : index
    %1 = vector.load %arg2[%c0_1, %c0_2] : memref<16x32xbf16, #tpu.memory_space<vmem>>, vector<16x32xbf16>
    %cst = arith.constant dense<0.000000e+00> : vector<128x32xf32>
    %2 = tpu.matmul %0, %1, %cst {dimension_numbers = #tpu.dot_dimension_numbers<[1], [0], [0], [1], [0, 0, 1, 1], [], []>} : vector<128x16xbf16>, vector<16x32xbf16>, vector<128x32xf32> -> vector<128x32xf32>
    %c0_3 = arith.constant 0 : index
    %c0_4 = arith.constant 0 : index
    %3 = vector.load %arg3[%c0_3, %c0_4] : memref<1x32xf32, #tpu.memory_space<vmem>>, vector<1x32xf32>
    %4 = vector.broadcast %3 : vector<1x32xf32> to vector<128x32xf32>
    %5 = arith.addf %2, %4 : vector<128x32xf32>
    %cst_5 = arith.constant 0.000000e+00 : f32
    %6 = vector.broadcast %cst_5 : f32 to vector<128x32xf32>
    %7 = arith.maximumf %5, %6 : vector<128x32xf32>
    %8 = arith.truncf %7 : vector<128x32xf32> to vector<128x32xbf16>
    %c0_6 = arith.constant 0 : index
    %c0_7 = arith.constant 0 : index
    %9 = vector.load %arg4[%c0_6, %c0_7] : memref<32x16xbf16, #tpu.memory_space<vmem>>, vector<32x16xbf16>
    %cst_8 = arith.constant dense<0.000000e+00> : vector<128x16xf32>
    %10 = tpu.matmul %8, %9, %cst_8 {dimension_numbers = #tpu.dot_dimension_numbers<[1], [0], [0], [1], [0, 0, 1, 1], [], []>} : vector<128x32xbf16>, vector<32x16xbf16>, vector<128x16xf32> -> vector<128x16xf32>
    %c0_9 = arith.constant 0 : index
    %c0_10 = arith.constant 0 : index
    %11 = vector.load %arg5[%c0_9, %c0_10] : memref<1x16xf32, #tpu.memory_space<vmem>>, vector<1x16xf32>
    %12 = vector.broadcast %11 : vector<1x16xf32> to vector<128x16xf32>
    %13 = arith.addf %10, %12 : vector<128x16xf32>
    %cst_11 = arith.constant 0.000000e+00 : f32
    %14 = vector.broadcast %cst_11 : f32 to vector<128x16xf32>
    %15 = arith.maximumf %13, %14 : vector<128x16xf32>
    %16 = arith.truncf %15 : vector<128x16xf32> to vector<128x16xbf16>
    %c0_12 = arith.constant 0 : index
    %c0_13 = arith.constant 0 : index
    %17 = vector.load %arg6[%c0_12, %c0_13] : memref<16x8xbf16, #tpu.memory_space<vmem>>, vector<16x8xbf16>
    %cst_14 = arith.constant dense<0.000000e+00> : vector<128x8xf32>
    %18 = tpu.matmul %16, %17, %cst_14 {dimension_numbers = #tpu.dot_dimension_numbers<[1], [0], [0], [1], [0, 0, 1, 1], [], []>} : vector<128x16xbf16>, vector<16x8xbf16>, vector<128x8xf32> -> vector<128x8xf32>
    %c0_15 = arith.constant 0 : index
    %c0_16 = arith.constant 0 : index
    %19 = vector.load %arg7[%c0_15, %c0_16] : memref<1x8xf32, #tpu.memory_space<vmem>>, vector<1x8xf32>
    %20 = vector.broadcast %19 : vector<1x8xf32> to vector<128x8xf32>
    %21 = arith.addf %18, %20 : vector<128x8xf32>
    %cst_17 = arith.constant 0.000000e+00 : f32
    %22 = vector.broadcast %cst_17 : f32 to vector<128x8xf32>
    %23 = arith.maximumf %21, %22 : vector<128x8xf32>
    %24 = arith.truncf %23 : vector<128x8xf32> to vector<128x8xbf16>
    %c0_18 = arith.constant 0 : index
    %c0_19 = arith.constant 0 : index
    %25 = vector.load %arg8[%c0_18, %c0_19] : memref<8x256xbf16, #tpu.memory_space<vmem>>, vector<8x256xbf16>
    %cst_20 = arith.constant dense<0.000000e+00> : vector<128x256xf32>
    %26 = tpu.matmul %24, %25, %cst_20 {dimension_numbers = #tpu.dot_dimension_numbers<[1], [0], [0], [1], [0, 0, 1, 1], [], []>} : vector<128x8xbf16>, vector<8x256xbf16>, vector<128x256xf32> -> vector<128x256xf32>
    %c0_21 = arith.constant 0 : index
    %c0_22 = arith.constant 0 : index
    %27 = vector.load %arg9[%c0_21, %c0_22] : memref<1x256xf32, #tpu.memory_space<vmem>>, vector<1x256xf32>
    %28 = vector.broadcast %27 : vector<1x256xf32> to vector<128x256xf32>
    %29 = arith.addf %26, %28 : vector<128x256xf32>
    %30 = math.tanh %29 : vector<128x256xf32>
    %31 = vector.extract_strided_slice %30 {offsets = [0, 0], sizes = [128, 128], strides = [1, 1]} : vector<128x256xf32> to vector<128x128xf32>
    %c0_23 = arith.constant 0 : index
    %c0_24 = arith.constant 0 : index
    %32 = vector.load %arg10[%c0_23, %c0_24] : memref<128x128xf32, #tpu.memory_space<vmem>>, vector<128x128xf32>
    tpu.vector_store %arg10[%c0_23, %c0_24], %31 {strides = array<i32>} : memref<128x128xf32, #tpu.memory_space<vmem>>, vector<128x128xf32>,
    %33 = vector.extract_strided_slice %30 {offsets = [0, 128], sizes = [128, 128], strides = [1, 1]} : vector<128x256xf32> to vector<128x128xf32>
    %cst_25 = arith.constant 1.000000e+00 : f32
    %34 = vector.broadcast %cst_25 : f32 to vector<128x128xf32>
    %35 = arith.addf %33, %34 : vector<128x128xf32>
    %cst_26 = arith.constant 1.050000e+01 : f32
    %36 = vector.broadcast %cst_26 : f32 to vector<128x128xf32>
    %37 = arith.mulf %36, %35 : vector<128x128xf32>
    %cst_27 = arith.constant -2.000000e+01 : f32
    %38 = vector.broadcast %cst_27 : f32 to vector<128x128xf32>
    %39 = arith.addf %38, %37 : vector<128x128xf32>
    %cst_28 = arith.constant 2.000000e+00 : f32
    %40 = vector.broadcast %cst_28 : f32 to vector<128x128xf32>
    %41 = arith.mulf %40, %39 : vector<128x128xf32>
    %42 = math.exp %41 : vector<128x128xf32>
    %c0_29 = arith.constant 0 : index
    %c0_30 = arith.constant 0 : index
    %43 = vector.load %arg11[%c0_29, %c0_30] : memref<128x128xf32, #tpu.memory_space<vmem>>, vector<128x128xf32>
    tpu.vector_store %arg11[%c0_29, %c0_30], %42 {strides = array<i32>} : memref<128x128xf32, #tpu.memory_space<vmem>>, vector<128x128xf32>,
    return
  }
  func.func @transform_0(%arg0: i32) -> (i32, i32) {
    %c0_i32 = arith.constant 0 : i32
    %c0_i32_0 = arith.constant 0 : i32
    return %arg0, %c0_i32 : i32, i32
  }
  func.func @transform_1(%arg0: i32) -> (i32, i32) {
    %c0_i32 = arith.constant 0 : i32
    %c0_i32_0 = arith.constant 0 : i32
    %c0_i32_1 = arith.constant 0 : i32
    return %c0_i32, %c0_i32_0 : i32, i32
  }
  func.func @transform_2(%arg0: i32) -> (i32, i32) {
    %c0_i32 = arith.constant 0 : i32
    %c0_i32_0 = arith.constant 0 : i32
    %c0_i32_1 = arith.constant 0 : i32
    return %c0_i32, %c0_i32_0 : i32, i32
  }
  func.func @transform_3(%arg0: i32) -> (i32, i32) {
    %c0_i32 = arith.constant 0 : i32
    %c0_i32_0 = arith.constant 0 : i32
    %c0_i32_1 = arith.constant 0 : i32
    return %c0_i32, %c0_i32_0 : i32, i32
  }
  func.func @transform_4(%arg0: i32) -> (i32, i32) {
    %c0_i32 = arith.constant 0 : i32
    %c0_i32_0 = arith.constant 0 : i32
    %c0_i32_1 = arith.constant 0 : i32
    return %c0_i32, %c0_i32_0 : i32, i32
  }
  func.func @transform_5(%arg0: i32) -> (i32, i32) {
    %c0_i32 = arith.constant 0 : i32
    %c0_i32_0 = arith.constant 0 : i32
    %c0_i32_1 = arith.constant 0 : i32
    return %c0_i32, %c0_i32_0 : i32, i32
  }
  func.func @transform_6(%arg0: i32) -> (i32, i32) {
    %c0_i32 = arith.constant 0 : i32
    %c0_i32_0 = arith.constant 0 : i32
    %c0_i32_1 = arith.constant 0 : i32
    return %c0_i32, %c0_i32_0 : i32, i32
  }
  func.func @transform_7(%arg0: i32) -> (i32, i32) {
    %c0_i32 = arith.constant 0 : i32
    %c0_i32_0 = arith.constant 0 : i32
    %c0_i32_1 = arith.constant 0 : i32
    return %c0_i32, %c0_i32_0 : i32, i32
  }
  func.func @transform_8(%arg0: i32) -> (i32, i32) {
    %c0_i32 = arith.constant 0 : i32
    %c0_i32_0 = arith.constant 0 : i32
    %c0_i32_1 = arith.constant 0 : i32
    return %c0_i32, %c0_i32_0 : i32, i32
  }
  func.func @transform_9(%arg0: i32) -> (i32, i32) {
    %c0_i32 = arith.constant 0 : i32
    %c0_i32_0 = arith.constant 0 : i32
    return %arg0, %c0_i32 : i32, i32
  }
  func.func @transform_10(%arg0: i32) -> (i32, i32) {
    %c0_i32 = arith.constant 0 : i32
    %c0_i32_0 = arith.constant 0 : i32
    return %arg0, %c0_i32 : i32, i32
  }
}

</mosaic_0001>

<bundles_post_ra>
// kernel: tpu_custom_call.1
= control target key start
LH: loop header
LB: loop body
LE: loop exit
PB: predicated region body
PF: predicated region fallthrough
CT: control target
= control target key end

     0   :  { %16 = vsyncpa [#allocation3], 0  ;;  %vm105_vm0 = vcmask 130048   ;;  %s1254_s0 = inlined_call_operand.vmem [shape: bf16[128,16], index: 0, kind: input, shape index: {}]   ;;  %s1255_s1 = inlined_call_operand.vmem [shape: bf16[16,32], index: 1, kind: input, shape index: {}]   ;;  %s1256_s2 = inlined_call_operand.vmem [shape: f32[1,32], index: 2, kind: input, shape index: {}]   ;;  %s1257_s3 = inlined_call_operand.vmem [shape: bf16[32,16], index: 3, kind: input, shape index: {}]   ;;  %s1258_s4 = inlined_call_operand.vmem [shape: f32[1,16], index: 4, kind: input, shape index: {}]   ;;  %s1259_s5 = inlined_call_operand.vmem [shape: bf16[16,8], index: 5, kind: input, shape index: {}]   ;;  %s1260_s6 = inlined_call_operand.vmem [shape: f32[1,8], index: 6, kind: input, shape index: {}]   ;;  %s1261_s7 = inlined_call_operand.vmem [shape: bf16[8,256], index: 7, kind: input, shape index: {}]   ;;  %s1262_s8 = inlined_call_operand.vmem [shape: f32[1,256], index: 8, kind: input, shape index: {}]   ;;  %s1263_s9 = inlined_call_operand.hbm [shape: f32[128,128], index: 9, kind: output, shape index: {0}]   ;;  %s1264_s10 = inlined_call_operand.hbm [shape: f32[128,128], index: 10, kind: output, shape index: {1}]  }
   0x1   :  { %v864_v0 = vld [vmem:[%s1255_s1] sm:$0xff]  ;;  %v858_v2 = vld [vmem:[%s1254_s0 + $0x10] sm:$0xff]  ;;  %v866_v5 = vld [vmem:[%s1257_s3 + $0x8] sm:$0xff] }
   0x2   :  { %v856_v1 = vld [vmem:[%s1254_s0] sm:$0xff]  ;;  %137 = vmatpush.bf16.msra.mxu0 %v864_v0  ;;  %868 = vmatpush.bf16.msra.mxu1 %v864_v0  ;;  %v862_v4 = vld [vmem:[%s1254_s0 + $0x30] sm:$0xff] }
   0x3   :  { %v860_v3 = vld [vmem:[%s1254_s0 + $0x20] sm:$0xff]  ;;  %869 = vmatpush.bf16.msra.mxu2 %v864_v0  ;;  %870 = vmatpush.bf16.msra.mxu3 %v864_v0 }
   0x5   :  { %804 = vmatmul.msk.bf16.vlgmr.msra.gmra.mxu0 %vm105_vm0, %v856_v1  ;;  %806 = vmatmul.msk.bf16.vlgmr.msra.gmra.mxu1 %vm105_vm0, %v858_v2 }
   0x6   :  { %17 = vsyncpa [#allocation5], 0  ;;  %808 = vmatmul.msk.bf16.vlgmr.msra.gmra.mxu2 %vm105_vm0, %v860_v3  ;;  %810 = vmatmul.msk.bf16.vlgmr.msra.gmra.mxu3 %vm105_vm0, %v862_v4  ;;  %v865_v6 = vld [vmem:[%s1257_s3] sm:$0xff]  ;;  %v857_v7 = vld [vmem:[%s1254_s0 + $0x8] sm:$0xff]  ;;  %vm223_vm1 = vcmask 261120   ;;  %vm467_vm2 = vcmask 1043456  }
   0x7   :  { %254 = vmatpush.bf16.msrb.mxu1 %v866_v5  ;;  %v859_v8 = vld [vmem:[%s1254_s0 + $0x18] sm:$0xff]  ;;  %v861_v9 = vld [vmem:[%s1254_s0 + $0x28] sm:$0xff]  ;;  %v875_v12 = vld [vmem:[%s1256_s2] ss:$0 sm:$0xff]  ;;  %vm442_vm3 = vcmask 64512   ;;  %s738_s22 = sshll.u32 %s1263_s9, 4  ;;  %s739_s22 = int_to_ptr.hbm [resolvable:$true] %s738_s22 }
   0x8   :  { %v863_v10 = vld [vmem:[%s1254_s0 + $0x38] sm:$0xff]  ;;  %v867_v48 = vld [vmem:[%s1259_s5] sm:$0xff]  ;;  %s1027_s1 = smov 128   ;;  %s1028_s23 = smov 8  }
   0x9   :  { %364 = vmatpush.bf16.msrb.mxu2 %v867_v48  ;;  %v430_v48 = vld [vmem:[%s1261_s7] sm:$0xff]  ;;  %s1029_s24 = smov [#allocation4]   ;;  %s751_s27 = sshll.u32 %s1264_s10, 4  ;;  %s752_s27 = int_to_ptr.hbm [resolvable:$true] %s751_s27 }
   0xa   :  { %s749_s25 = sshll.u32 %s1029_s24, 4  ;;  %s750_s25 = int_to_ptr.vmem [resolvable:$true] %s749_s25 }
   0xb   :  { %255 = vmatpush.bf16.msrb.mxu1 %v865_v6  ;;  %v1143_v6 = vld [vmem:[%s1258_s4] ss:$0 sm:$0xff] }
  0x15   :  { %805 = vmatmul.msk.bf16.gmra.mxu0 %vm105_vm0, %v857_v7  ;;  %807 = vmatmul.msk.bf16.gmra.mxu1 %vm105_vm0, %v859_v8 }
  0x16   :  { %809 = vmatmul.msk.bf16.gmra.mxu2 %vm105_vm0, %v861_v9  ;;  %811 = vmatmul.msk.bf16.gmra.mxu3 %vm105_vm0, %v863_v10 }
  0x82   :  { %v139_v11 = vpop.f32.mrf.mxu0  ;;  %v149_v20 = vpop.f32.mrf.mxu1 }
  0x83   :  { %v140_v13 = vadd.f32 %v875_v12, %v139_v11  ;;  %v150_v28 = vadd.f32 %v875_v12, %v149_v20 }
  0x85   :  { %v179_v16 = vmax.f32 %v140_v13, 0.0  ;;  %v183_v31 = vmax.f32 %v150_v28, 0.0 }
  0x89   :  { %v159_v35 = vpop.f32.mrf.mxu2  ;;  %v169_v50 = vpop.f32.mrf.mxu3 }
  0x8a   :  { %v141_v14 = vpop.f32.mrf.mxu0  ;;  %v151_v27 = vpop.f32.mrf.mxu1  ;;  %v160_v42 = vadd.f32 %v875_v12, %v159_v35  ;;  %v170_v57 = vadd.f32 %v875_v12, %v169_v50  ;;  %v439_v50 = vunpack.c.h.b16 %v430_v48 }
  0x8b   :  { %v142_v15 = vadd.f32 %v875_v12, %v141_v14  ;;  %v152_v29 = vadd.f32 %v875_v12, %v151_v27 }
  0x8c   :  { %v187_v45 = vmax.f32 %v160_v42, 0.0  ;;  %v191_v60 = vmax.f32 %v170_v57, 0.0 }
  0x8d   :  { %v180_v17 = vmax.f32 %v142_v15, 0.0  ;;  %v184_v32 = vmax.f32 %v152_v29, 0.0 }
  0x8f   :  { %v195_v18 = vpack.c.bf16 %v180_v17, %v179_v16  ;;  %v197_v33 = vpack.c.bf16 %v184_v32, %v183_v31 }
  0x91   :  { %820 = vmatmul.msk.bf16.vlgmr.msrb.gmra.mxu1 %vm223_vm1, %v195_v18  ;;  %v161_v41 = vpop.f32.mrf.mxu2  ;;  %v171_v56 = vpop.f32.mrf.mxu3 }
  0x92   :  { %v144_v19 = vpop.f32.mrf.mxu0  ;;  %v154_v30 = vpop.f32.mrf.mxu1  ;;  %v162_v43 = vadd.f32 %v875_v12, %v161_v41  ;;  %v172_v58 = vadd.f32 %v875_v12, %v171_v56 }
  0x93   :  { %v145_v21 = vadd.f32 %v875_v12, %v144_v19  ;;  %v155_v36 = vadd.f32 %v875_v12, %v154_v30 }
  0x94   :  { %v188_v46 = vmax.f32 %v162_v43, 0.0  ;;  %v192_v61 = vmax.f32 %v172_v58, 0.0 }
  0x95   :  { %v181_v24 = vmax.f32 %v145_v21, 0.0  ;;  %v185_v38 = vmax.f32 %v155_v36, 0.0 }
  0x96   :  { %v199_v47 = vpack.c.bf16 %v188_v46, %v187_v45  ;;  %v201_v62 = vpack.c.bf16 %v192_v61, %v191_v60 }
  0x99   :  { %v164_v44 = vpop.f32.mrf.mxu2  ;;  %v174_v59 = vpop.f32.mrf.mxu3 }
  0x9a   :  { %v146_v22 = vpop.f32.mrf.mxu0  ;;  %v156_v34 = vpop.f32.mrf.mxu1  ;;  %v165_v51 = vadd.f32 %v875_v12, %v164_v44  ;;  %v175_v0 = vadd.f32 %v875_v12, %v174_v59 }
  0x9b   :  { %v147_v23 = vadd.f32 %v875_v12, %v146_v22  ;;  %v157_v37 = vadd.f32 %v875_v12, %v156_v34 }
  0x9c   :  { %v189_v53 = vmax.f32 %v165_v51, 0.0  ;;  %v193_v2 = vmax.f32 %v175_v0, 0.0  ;;  %v438_v51 = vunpack.c.l.b16 %v430_v48 }
  0x9d   :  { %v182_v25 = vmax.f32 %v147_v23, 0.0  ;;  %v186_v39 = vmax.f32 %v157_v37, 0.0 }
  0x9f   :  { %v196_v26 = vpack.c.bf16 %v182_v25, %v181_v24  ;;  %v198_v40 = vpack.c.bf16 %v186_v39, %v185_v38 }
  0xa1   :  { %821 = vmatmul.msk.bf16.gmra.mxu1 %vm223_vm1, %v196_v26  ;;  %v166_v49 = vpop.f32.mrf.mxu2  ;;  %v176_v63 = vpop.f32.mrf.mxu3 }
  0xa2   :  { %v167_v52 = vadd.f32 %v875_v12, %v166_v49  ;;  %v177_v1 = vadd.f32 %v875_v12, %v176_v63 }
  0xa4   :  { %v190_v54 = vmax.f32 %v167_v52, 0.0  ;;  %v194_v3 = vmax.f32 %v177_v1, 0.0  ;;  %v441_v52 = vpack.c.b16 %v439_v50, %v439_v50 }
  0xa6   :  { %v200_v55 = vpack.c.bf16 %v190_v54, %v189_v53  ;;  %v202_v4 = vpack.c.bf16 %v194_v3, %v193_v2  ;;  %v440_v53 = vpack.c.b16 %v438_v51, %v438_v51  ;;  %v472_v54 = vsel %vm467_vm2, %v441_v52, 0 }
  0xa7   :  { %530 = vmatpush.bf16.msrb.mxu0 %v472_v54 }
  0xb1   :  { %822 = vmatmul.msk.bf16.gmra.mxu1 %vm223_vm1, %v197_v33 }
  0xc1   :  { %823 = vmatmul.msk.bf16.gmra.mxu1 %vm223_vm1, %v198_v40 }
  0xd1   :  { %824 = vmatmul.msk.bf16.gmra.mxu1 %vm223_vm1, %v199_v47 }
  0xe1   :  { %825 = vmatmul.msk.bf16.gmra.mxu1 %vm223_vm1, %v200_v55  ;;  %v469_v55 = vsel %vm467_vm2, %v440_v53, 0 }
  0xe2   :  { %481 = vmatpush.bf16.msrb.mxu3 %v469_v55 }
  0xf1   :  { %826 = vmatmul.msk.bf16.gmra.mxu1 %vm223_vm1, %v201_v62 }
 0x101   :  { %827 = vmatmul.msk.bf16.gmra.mxu1 %vm223_vm1, %v202_v4 }
 0x10e   :  { %v257_v5 = vpop.f32.mrf.mxu1 }
 0x10f   :  { %v258_v7 = vadd.f32 %v1143_v6, %v257_v5 }
 0x111   :  { %v297_v10 = vmax.f32 %v258_v7, 0.0  ;;  %v1175_v7 = vld [vmem:[%s1260_s6] ss:$0 sm:$0xff] }
 0x116   :  { %v259_v8 = vpop.f32.mrf.mxu1 }
 0x117   :  { %v260_v9 = vadd.f32 %v1143_v6, %v259_v8 }
 0x119   :  { %v298_v11 = vmax.f32 %v260_v9, 0.0 }
 0x11b   :  { %v313_v13 = vpack.c.bf16 %v298_v11, %v297_v10 }
 0x11d   :  { %832 = vmatmul.msk.bf16.vlgmr.msrb.gmra.mxu2 %vm105_vm0, %v313_v13 }
 0x11e   :  { %v262_v12 = vpop.f32.mrf.mxu1 }
 0x11f   :  { %v263_v14 = vadd.f32 %v1143_v6, %v262_v12 }
 0x121   :  { %v299_v17 = vmax.f32 %v263_v14, 0.0 }
 0x126   :  { %v264_v15 = vpop.f32.mrf.mxu1 }
 0x127   :  { %v265_v16 = vadd.f32 %v1143_v6, %v264_v15 }
 0x129   :  { %v300_v18 = vmax.f32 %v265_v16, 0.0 }
 0x12b   :  { %v314_v19 = vpack.c.bf16 %v300_v18, %v299_v17 }
 0x12d   :  { %833 = vmatmul.msk.bf16.gmra.mxu2 %vm105_vm0, %v314_v19 }
 0x12e   :  { %v267_v20 = vpop.f32.mrf.mxu1 }
 0x12f   :  { %v268_v21 = vadd.f32 %v1143_v6, %v267_v20 }
 0x131   :  { %v301_v24 = vmax.f32 %v268_v21, 0.0 }
 0x136   :  { %v269_v22 = vpop.f32.mrf.mxu1 }
 0x137   :  { %v270_v23 = vadd.f32 %v1143_v6, %v269_v22 }
 0x139   :  { %v302_v25 = vmax.f32 %v270_v23, 0.0 }
 0x13b   :  { %v315_v26 = vpack.c.bf16 %v302_v25, %v301_v24 }
 0x13d   :  { %834 = vmatmul.msk.bf16.gmra.mxu2 %vm105_vm0, %v315_v26 }
 0x13e   :  { %v272_v27 = vpop.f32.mrf.mxu1 }
 0x13f   :  { %v273_v28 = vadd.f32 %v1143_v6, %v272_v27 }
 0x141   :  { %v303_v31 = vmax.f32 %v273_v28, 0.0 }
 0x146   :  { %v274_v29 = vpop.f32.mrf.mxu1 }
 0x147   :  { %v275_v30 = vadd.f32 %v1143_v6, %v274_v29 }
 0x149   :  { %v304_v32 = vmax.f32 %v275_v30, 0.0 }
 0x14b   :  { %v316_v33 = vpack.c.bf16 %v304_v32, %v303_v31 }
 0x14d   :  { %835 = vmatmul.msk.bf16.gmra.mxu2 %vm105_vm0, %v316_v33 }
 0x14e   :  { %v277_v34 = vpop.f32.mrf.mxu1 }
 0x14f   :  { %v278_v35 = vadd.f32 %v1143_v6, %v277_v34 }
 0x151   :  { %v305_v38 = vmax.f32 %v278_v35, 0.0 }
 0x156   :  { %v279_v36 = vpop.f32.mrf.mxu1 }
 0x157   :  { %v280_v37 = vadd.f32 %v1143_v6, %v279_v36 }
 0x159   :  { %v306_v39 = vmax.f32 %v280_v37, 0.0 }
 0x15b   :  { %v317_v40 = vpack.c.bf16 %v306_v39, %v305_v38 }
 0x15d   :  { %836 = vmatmul.msk.bf16.gmra.mxu2 %vm105_vm0, %v317_v40 }
 0x15e   :  { %v282_v41 = vpop.f32.mrf.mxu1 }
 0x15f   :  { %v283_v42 = vadd.f32 %v1143_v6, %v282_v41 }
 0x161   :  { %v307_v45 = vmax.f32 %v283_v42, 0.0 }
 0x166   :  { %v284_v43 = vpop.f32.mrf.mxu1 }
 0x167   :  { %v285_v44 = vadd.f32 %v1143_v6, %v284_v43 }
 0x169   :  { %v308_v46 = vmax.f32 %v285_v44, 0.0 }
 0x16b   :  { %v318_v47 = vpack.c.bf16 %v308_v46, %v307_v45 }
 0x16d   :  { %837 = vmatmul.msk.bf16.gmra.mxu2 %vm105_vm0, %v318_v47 }
 0x16e   :  { %v287_v49 = vpop.f32.mrf.mxu1 }
 0x16f   :  { %v288_v56 = vadd.f32 %v1143_v6, %v287_v49 }
 0x171   :  { %v309_v59 = vmax.f32 %v288_v56, 0.0 }
 0x176   :  { %v289_v57 = vpop.f32.mrf.mxu1 }
 0x177   :  { %v290_v58 = vadd.f32 %v1143_v6, %v289_v57 }
 0x179   :  { %v310_v60 = vmax.f32 %v290_v58, 0.0 }
 0x17b   :  { %v319_v61 = vpack.c.bf16 %v310_v60, %v309_v59 }
 0x17d   :  { %838 = vmatmul.msk.bf16.gmra.mxu2 %vm105_vm0, %v319_v61 }
 0x17e   :  { %v292_v62 = vpop.f32.mrf.mxu1 }
 0x17f   :  { %v293_v63 = vadd.f32 %v1143_v6, %v292_v62  ;;  %v431_v62 = vld [vmem:[%s1262_s8] sm:$0x3]  ;;  %s1026_s8 = smov [#allocation2]  }
 0x180   :  { %s736_s19 = sshll.u32 %s1026_s8, 4  ;;  %s737_s19 = int_to_ptr.vmem [resolvable:$true] %s736_s19 }
 0x181   :  { %v311_v2 = vmax.f32 %v293_v63, 0.0  ;;  %v1212_v63 = vperm.slane %v431_v62, 1 }
 0x186   :  { %v294_v0 = vpop.f32.mrf.mxu1 }
 0x187   :  { %v295_v1 = vadd.f32 %v1143_v6, %v294_v0 }
 0x189   :  { %v312_v3 = vmax.f32 %v295_v1, 0.0 }
 0x18b   :  { %v320_v4 = vpack.c.bf16 %v312_v3, %v311_v2  ;;  %v1215_v2 = vperm.slane %v431_v62, 0 }
 0x18d   :  { %839 = vmatmul.msk.bf16.gmra.mxu2 %vm105_vm0, %v320_v4 }
 0x1a0   :  { %v366_v5 = vpop.f32.mrf.mxu2 }
 0x1a1   :  { %v367_v8 = vadd.f32 %v1175_v7, %v366_v5 }
 0x1a3   :  { %v406_v11 = vmax.f32 %v367_v8, 0.0 }
 0x1a8   :  { %v368_v9 = vpop.f32.mrf.mxu2 }
 0x1a9   :  { %v369_v10 = vadd.f32 %v1175_v7, %v368_v9 }
 0x1ab   :  { %v407_v13 = vmax.f32 %v369_v10, 0.0 }
 0x1ad   :  { %v422_v6 = vpack.c.bf16 %v407_v13, %v406_v11 }
 0x1af   :  { %840 = vmatmul.msk.bf16.vlgmr.msrb.gmra.mxu3 %vm442_vm3, %v422_v6  ;;  %848 = vmatmul.msk.bf16.vlgmr.msrb.gmra.mxu0 %vm442_vm3, %v422_v6 }
 0x1b0   :  { %v371_v12 = vpop.f32.mrf.mxu2 }
 0x1b1   :  { %v372_v14 = vadd.f32 %v1175_v7, %v371_v12 }
 0x1b3   :  { %v408_v17 = vmax.f32 %v372_v14, 0.0 }
 0x1b8   :  { %v373_v15 = vpop.f32.mrf.mxu2 }
 0x1b9   :  { %v374_v16 = vadd.f32 %v1175_v7, %v373_v15 }
 0x1bb   :  { %v409_v18 = vmax.f32 %v374_v16, 0.0 }
 0x1bd   :  { %v423_v19 = vpack.c.bf16 %v409_v18, %v408_v17 }
 0x1bf   :  { %841 = vmatmul.msk.bf16.gmra.mxu3 %vm442_vm3, %v423_v19  ;;  %849 = vmatmul.msk.bf16.gmra.mxu0 %vm442_vm3, %v423_v19 }
 0x1c0   :  { %v376_v20 = vpop.f32.mrf.mxu2 }
 0x1c1   :  { %v377_v21 = vadd.f32 %v1175_v7, %v376_v20 }
 0x1c3   :  { %v410_v24 = vmax.f32 %v377_v21, 0.0 }
 0x1c8   :  { %v378_v22 = vpop.f32.mrf.mxu2 }
 0x1c9   :  { %v379_v23 = vadd.f32 %v1175_v7, %v378_v22 }
 0x1cb   :  { %v411_v25 = vmax.f32 %v379_v23, 0.0 }
 0x1cd   :  { %v424_v26 = vpack.c.bf16 %v411_v25, %v410_v24 }
 0x1cf   :  { %842 = vmatmul.msk.bf16.gmra.mxu3 %vm442_vm3, %v424_v26  ;;  %850 = vmatmul.msk.bf16.gmra.mxu0 %vm442_vm3, %v424_v26 }
 0x1d0   :  { %v381_v27 = vpop.f32.mrf.mxu2 }
 0x1d1   :  { %v382_v28 = vadd.f32 %v1175_v7, %v381_v27 }
 0x1d3   :  { %v412_v31 = vmax.f32 %v382_v28, 0.0 }
 0x1d8   :  { %v383_v29 = vpop.f32.mrf.mxu2 }
 0x1d9   :  { %v384_v30 = vadd.f32 %v1175_v7, %v383_v29 }
 0x1db   :  { %v413_v32 = vmax.f32 %v384_v30, 0.0 }
 0x1dd   :  { %v425_v33 = vpack.c.bf16 %v413_v32, %v412_v31 }
 0x1df   :  { %843 = vmatmul.msk.bf16.gmra.mxu3 %vm442_vm3, %v425_v33  ;;  %851 = vmatmul.msk.bf16.gmra.mxu0 %vm442_vm3, %v425_v33 }
 0x1e0   :  { %v386_v34 = vpop.f32.mrf.mxu2 }
 0x1e1   :  { %v387_v35 = vadd.f32 %v1175_v7, %v386_v34 }
 0x1e3   :  { %v414_v38 = vmax.f32 %v387_v35, 0.0 }
 0x1e8   :  { %v388_v36 = vpop.f32.mrf.mxu2 }
 0x1e9   :  { %v389_v37 = vadd.f32 %v1175_v7, %v388_v36 }
 0x1eb   :  { %v415_v39 = vmax.f32 %v389_v37, 0.0 }
 0x1ed   :  { %v426_v40 = vpack.c.bf16 %v415_v39, %v414_v38 }
 0x1ef   :  { %844 = vmatmul.msk.bf16.gmra.mxu3 %vm442_vm3, %v426_v40  ;;  %852 = vmatmul.msk.bf16.gmra.mxu0 %vm442_vm3, %v426_v40 }
 0x1f0   :  { %v391_v41 = vpop.f32.mrf.mxu2 }
 0x1f1   :  { %v392_v42 = vadd.f32 %v1175_v7, %v391_v41 }
 0x1f3   :  { %v416_v45 = vmax.f32 %v392_v42, 0.0 }
 0x1f8   :  { %v393_v43 = vpop.f32.mrf.mxu2 }
 0x1f9   :  { %v394_v44 = vadd.f32 %v1175_v7, %v393_v43 }
 0x1fb   :  { %v417_v46 = vmax.f32 %v394_v44, 0.0 }
 0x1fd   :  { %v427_v47 = vpack.c.bf16 %v417_v46, %v416_v45 }
 0x1ff   :  { %845 = vmatmul.msk.bf16.gmra.mxu3 %vm442_vm3, %v427_v47  ;;  %853 = vmatmul.msk.bf16.gmra.mxu0 %vm442_vm3, %v427_v47 }
 0x200   :  { %v396_v48 = vpop.f32.mrf.mxu2 }
 0x201   :  { %v397_v49 = vadd.f32 %v1175_v7, %v396_v48 }
 0x203   :  { %v418_v52 = vmax.f32 %v397_v49, 0.0 }
 0x208   :  { %v398_v50 = vpop.f32.mrf.mxu2 }
 0x209   :  { %v399_v51 = vadd.f32 %v1175_v7, %v398_v50 }
 0x20b   :  { %v419_v53 = vmax.f32 %v399_v51, 0.0 }
 0x20d   :  { %v428_v54 = vpack.c.bf16 %v419_v53, %v418_v52 }
 0x20f   :  { %846 = vmatmul.msk.bf16.gmra.mxu3 %vm442_vm3, %v428_v54  ;;  %854 = vmatmul.msk.bf16.gmra.mxu0 %vm442_vm3, %v428_v54 }
 0x210   :  { %v401_v55 = vpop.f32.mrf.mxu2 }
 0x211   :  { %v402_v56 = vadd.f32 %v1175_v7, %v401_v55 }
 0x213   :  { %v420_v59 = vmax.f32 %v402_v56, 0.0 }
 0x218   :  { %v403_v57 = vpop.f32.mrf.mxu2 }
 0x219   :  { %v404_v58 = vadd.f32 %v1175_v7, %v403_v57 }
 0x21b   :  { %v421_v60 = vmax.f32 %v404_v58, 0.0 }
 0x21d   :  { %v429_v61 = vpack.c.bf16 %v421_v60, %v420_v59 }
 0x21f   :  { %847 = vmatmul.msk.bf16.gmra.mxu3 %vm442_vm3, %v429_v61  ;;  %855 = vmatmul.msk.bf16.gmra.mxu0 %vm442_vm3, %v429_v61 }
 0x22c   :  { %v532_v0 = vpop.f32.mrf.mxu0 }
 0x22d   :  { %v533_v1 = vadd.f32 %v532_v0, %v1212_v63 }
 0x22f   :  { %878 = vtanh.f32 %v533_v1 }
 0x232   :  { %v483_v3 = vpop.f32.mrf.mxu3 }
 0x233   :  { %v484_v4 = vadd.f32 %v483_v3, %v1215_v2 }
 0x234   :  { %v534_v5 = vpop.f32.mrf.mxu0 }
 0x235   :  { %v879_v7 = vpop.eup %878  ;;  %880 = vtanh.f32 %v484_v4  ;;  %v535_v8 = vadd.f32 %v534_v5, %v1212_v63 }
 0x236   :  { %v620_v9 = vadd.f32 1.0, %v879_v7 }
 0x237   :  { %882 = vtanh.f32 %v535_v8 }
 0x238   :  { %v636_v10 = vmul.f32 10.5, %v620_v9 }
 0x23a   :  { %v652_v11 = vadd.f32 -20.0, %v636_v10  ;;  %v485_v13 = vpop.f32.mrf.mxu3 }
 0x23b   :  { %v881_v6 = vpop.eup %880  ;;  %v486_v12 = vadd.f32 %v485_v13, %v1215_v2 }
 0x23c   :  { %v668_v14 = vmul.f32 2.0, %v652_v11  ;;  %604 = vst [vmem:[#allocation2] sm:$0xff] %v881_v6  ;;  %v537_v15 = vpop.f32.mrf.mxu0 }
 0x23d   :  { %v883_v16 = vpop.eup %882  ;;  %884 = vtanh.f32 %v486_v12  ;;  %v538_v17 = vadd.f32 %v537_v15, %v1212_v63 }
 0x23e   :  { %v684_v18 = vmul.f32 1.442695, %v668_v14  ;;  %v621_v19 = vadd.f32 1.0, %v883_v16 }
 0x23f   :  { %886 = vtanh.f32 %v538_v17 }
 0x240   :  { %888 = vpow2.f32 %v684_v18  ;;  %v637_v20 = vmul.f32 10.5, %v621_v19 }
 0x242   :  { %v653_v21 = vadd.f32 -20.0, %v637_v20  ;;  %v488_v22 = vpop.f32.mrf.mxu3 }
 0x243   :  { %v885_v23 = vpop.eup %884  ;;  %v489_v24 = vadd.f32 %v488_v22, %v1215_v2 }
 0x244   :  { %v669_v25 = vmul.f32 2.0, %v653_v21  ;;  %605 = vst [vmem:[#allocation2 + $0x8] sm:$0xff] %v885_v23  ;;  %v539_v26 = vpop.f32.mrf.mxu0 }
 0x245   :  { %v887_v27 = vpop.eup %886  ;;  %890 = vtanh.f32 %v489_v24  ;;  %v540_v28 = vadd.f32 %v539_v26, %v1212_v63 }
 0x246   :  { %v889_v29 = vpop.eup %888  ;;  %v686_v30 = vmul.f32 1.442695, %v669_v25  ;;  %v622_v31 = vadd.f32 1.0, %v887_v27 }
 0x247   :  { %716 = vst [vmem:[#allocation4] sm:$0xff] %v889_v29  ;;  %892 = vtanh.f32 %v540_v28 }
 0x248   :  { %894 = vpow2.f32 %v686_v30  ;;  %v638_v32 = vmul.f32 10.5, %v622_v31 }
 0x24a   :  { %v654_v33 = vadd.f32 -20.0, %v638_v32  ;;  %v490_v34 = vpop.f32.mrf.mxu3 }
 0x24b   :  { %v891_v35 = vpop.eup %890  ;;  %v491_v36 = vadd.f32 %v490_v34, %v1215_v2 }
 0x24c   :  { %v670_v37 = vmul.f32 2.0, %v654_v33  ;;  %606 = vst [vmem:[#allocation2 + $0x10] sm:$0xff] %v891_v35  ;;  %v542_v38 = vpop.f32.mrf.mxu0 }
 0x24d   :  { %v893_v39 = vpop.eup %892  ;;  %896 = vtanh.f32 %v491_v36  ;;  %v543_v40 = vadd.f32 %v542_v38, %v1212_v63 }
 0x24e   :  { %v895_v41 = vpop.eup %894  ;;  %v688_v42 = vmul.f32 1.442695, %v670_v37  ;;  %v623_v43 = vadd.f32 1.0, %v893_v39 }
 0x24f   :  { %717 = vst [vmem:[#allocation4 + $0x8] sm:$0xff] %v895_v41  ;;  %898 = vtanh.f32 %v543_v40 }
 0x250   :  { %900 = vpow2.f32 %v688_v42  ;;  %v639_v44 = vmul.f32 10.5, %v623_v43 }
 0x252   :  { %v655_v45 = vadd.f32 -20.0, %v639_v44  ;;  %v493_v46 = vpop.f32.mrf.mxu3 }
 0x253   :  { %v897_v47 = vpop.eup %896  ;;  %v494_v48 = vadd.f32 %v493_v46, %v1215_v2 }
 0x254   :  { %v671_v49 = vmul.f32 2.0, %v655_v45  ;;  %607 = vst [vmem:[#allocation2 + $0x18] sm:$0xff] %v897_v47  ;;  %v544_v50 = vpop.f32.mrf.mxu0 }
 0x255   :  { %v899_v51 = vpop.eup %898  ;;  %902 = vtanh.f32 %v494_v48  ;;  %v545_v52 = vadd.f32 %v544_v50, %v1212_v63 }
 0x256   :  { %v901_v53 = vpop.eup %900  ;;  %v690_v54 = vmul.f32 1.442695, %v671_v49  ;;  %v624_v55 = vadd.f32 1.0, %v899_v51 }
 0x257   :  { %718 = vst [vmem:[#allocation4 + $0x10] sm:$0xff] %v901_v53  ;;  %904 = vtanh.f32 %v545_v52 }
 0x258   :  { %906 = vpow2.f32 %v690_v54  ;;  %v640_v56 = vmul.f32 10.5, %v624_v55 }
 0x25a   :  { %v656_v57 = vadd.f32 -20.0, %v640_v56  ;;  %v495_v58 = vpop.f32.mrf.mxu3 }
 0x25b   :  { %v903_v59 = vpop.eup %902  ;;  %v496_v60 = vadd.f32 %v495_v58, %v1215_v2 }
 0x25c   :  { %v672_v61 = vmul.f32 2.0, %v656_v57  ;;  %608 = vst [vmem:[#allocation2 + $0x20] sm:$0xff] %v903_v59  ;;  %v547_v62 = vpop.f32.mrf.mxu0 }
 0x25d   :  { %v905_v0 = vpop.eup %904  ;;  %908 = vtanh.f32 %v496_v60  ;;  %v548_v1 = vadd.f32 %v547_v62, %v1212_v63 }
 0x25e   :  { %v907_v3 = vpop.eup %906  ;;  %v692_v4 = vmul.f32 1.442695, %v672_v61  ;;  %v625_v5 = vadd.f32 1.0, %v905_v0 }
 0x25f   :  { %719 = vst [vmem:[#allocation4 + $0x18] sm:$0xff] %v907_v3  ;;  %910 = vtanh.f32 %v548_v1 }
 0x260   :  { %912 = vpow2.f32 %v692_v4  ;;  %v641_v7 = vmul.f32 10.5, %v625_v5 }
 0x262   :  { %v657_v8 = vadd.f32 -20.0, %v641_v7  ;;  %v498_v9 = vpop.f32.mrf.mxu3 }
 0x263   :  { %v909_v10 = vpop.eup %908  ;;  %v499_v11 = vadd.f32 %v498_v9, %v1215_v2 }
 0x264   :  { %v673_v13 = vmul.f32 2.0, %v657_v8  ;;  %609 = vst [vmem:[#allocation2 + $0x28] sm:$0xff] %v909_v10  ;;  %v549_v6 = vpop.f32.mrf.mxu0 }
 0x265   :  { %v911_v12 = vpop.eup %910  ;;  %914 = vtanh.f32 %v499_v11  ;;  %v550_v14 = vadd.f32 %v549_v6, %v1212_v63 }
 0x266   :  { %v913_v15 = vpop.eup %912  ;;  %v694_v16 = vmul.f32 1.442695, %v673_v13  ;;  %v626_v17 = vadd.f32 1.0, %v911_v12 }
 0x267   :  { %720 = vst [vmem:[#allocation4 + $0x20] sm:$0xff] %v913_v15  ;;  %916 = vtanh.f32 %v550_v14 }
 0x268   :  { %918 = vpow2.f32 %v694_v16  ;;  %v642_v18 = vmul.f32 10.5, %v626_v17 }
 0x26a   :  { %v658_v19 = vadd.f32 -20.0, %v642_v18  ;;  %v500_v20 = vpop.f32.mrf.mxu3 }
 0x26b   :  { %v915_v21 = vpop.eup %914  ;;  %v501_v22 = vadd.f32 %v500_v20, %v1215_v2 }
 0x26c   :  { %v674_v23 = vmul.f32 2.0, %v658_v19  ;;  %610 = vst [vmem:[#allocation2 + $0x30] sm:$0xff] %v915_v21  ;;  %v552_v24 = vpop.f32.mrf.mxu0 }
 0x26d   :  { %v917_v25 = vpop.eup %916  ;;  %920 = vtanh.f32 %v501_v22  ;;  %v553_v26 = vadd.f32 %v552_v24, %v1212_v63 }
 0x26e   :  { %v919_v27 = vpop.eup %918  ;;  %v696_v28 = vmul.f32 1.442695, %v674_v23  ;;  %v627_v29 = vadd.f32 1.0, %v917_v25 }
 0x26f   :  { %721 = vst [vmem:[#allocation4 + $0x28] sm:$0xff] %v919_v27  ;;  %922 = vtanh.f32 %v553_v26 }
 0x270   :  { %924 = vpow2.f32 %v696_v28  ;;  %v643_v30 = vmul.f32 10.5, %v627_v29 }
 0x272   :  { %v659_v31 = vadd.f32 -20.0, %v643_v30  ;;  %v503_v32 = vpop.f32.mrf.mxu3 }
 0x273   :  { %v921_v33 = vpop.eup %920  ;;  %v504_v34 = vadd.f32 %v503_v32, %v1215_v2 }
 0x274   :  { %v675_v35 = vmul.f32 2.0, %v659_v31  ;;  %611 = vst [vmem:[#allocation2 + $0x38] sm:$0xff] %v921_v33  ;;  %v554_v36 = vpop.f32.mrf.mxu0 }
 0x275   :  { %v923_v37 = vpop.eup %922  ;;  %926 = vtanh.f32 %v504_v34  ;;  %v555_v38 = vadd.f32 %v554_v36, %v1212_v63 }
 0x276   :  { %v925_v39 = vpop.eup %924  ;;  %v698_v40 = vmul.f32 1.442695, %v675_v35  ;;  %v628_v41 = vadd.f32 1.0, %v923_v37 }
 0x277   :  { %722 = vst [vmem:[#allocation4 + $0x30] sm:$0xff] %v925_v39  ;;  %928 = vtanh.f32 %v555_v38 }
 0x278   :  { %930 = vpow2.f32 %v698_v40  ;;  %v644_v42 = vmul.f32 10.5, %v628_v41 }
 0x27a   :  { %v660_v43 = vadd.f32 -20.0, %v644_v42  ;;  %v505_v44 = vpop.f32.mrf.mxu3 }
 0x27b   :  { %v927_v45 = vpop.eup %926  ;;  %v506_v46 = vadd.f32 %v505_v44, %v1215_v2 }
 0x27c   :  { %v676_v47 = vmul.f32 2.0, %v660_v43  ;;  %612 = vst [vmem:[#allocation2 + $0x40] sm:$0xff] %v927_v45  ;;  %v557_v48 = vpop.f32.mrf.mxu0 }
 0x27d   :  { %v929_v49 = vpop.eup %928  ;;  %932 = vtanh.f32 %v506_v46  ;;  %v558_v50 = vadd.f32 %v557_v48, %v1212_v63 }
 0x27e   :  { %v931_v51 = vpop.eup %930  ;;  %v700_v52 = vmul.f32 1.442695, %v676_v47  ;;  %v629_v53 = vadd.f32 1.0, %v929_v49 }
 0x27f   :  { %723 = vst [vmem:[#allocation4 + $0x38] sm:$0xff] %v931_v51  ;;  %934 = vtanh.f32 %v558_v50 }
 0x280   :  { %936 = vpow2.f32 %v700_v52  ;;  %v645_v54 = vmul.f32 10.5, %v629_v53 }
 0x282   :  { %v661_v55 = vadd.f32 -20.0, %v645_v54  ;;  %v508_v56 = vpop.f32.mrf.mxu3 }
 0x283   :  { %v933_v57 = vpop.eup %932  ;;  %v509_v58 = vadd.f32 %v508_v56, %v1215_v2 }
 0x284   :  { %v677_v59 = vmul.f32 2.0, %v661_v55  ;;  %613 = vst [vmem:[#allocation2 + $0x48] sm:$0xff] %v933_v57  ;;  %v559_v60 = vpop.f32.mrf.mxu0 }
 0x285   :  { %v935_v61 = vpop.eup %934  ;;  %938 = vtanh.f32 %v509_v58  ;;  %v560_v62 = vadd.f32 %v559_v60, %v1212_v63 }
 0x286   :  { %v937_v0 = vpop.eup %936  ;;  %v702_v1 = vmul.f32 1.442695, %v677_v59  ;;  %v630_v3 = vadd.f32 1.0, %v935_v61 }
 0x287   :  { %724 = vst [vmem:[#allocation4 + $0x40] sm:$0xff] %v937_v0  ;;  %940 = vtanh.f32 %v560_v62 }
 0x288   :  { %942 = vpow2.f32 %v702_v1  ;;  %v646_v4 = vmul.f32 10.5, %v630_v3 }
 0x28a   :  { %v662_v5 = vadd.f32 -20.0, %v646_v4  ;;  %v510_v7 = vpop.f32.mrf.mxu3 }
 0x28b   :  { %v939_v8 = vpop.eup %938  ;;  %v511_v9 = vadd.f32 %v510_v7, %v1215_v2 }
 0x28c   :  { %v678_v10 = vmul.f32 2.0, %v662_v5  ;;  %614 = vst [vmem:[#allocation2 + $0x50] sm:$0xff] %v939_v8  ;;  %v562_v11 = vpop.f32.mrf.mxu0 }
 0x28d   :  { %v941_v13 = vpop.eup %940  ;;  %944 = vtanh.f32 %v511_v9  ;;  %v563_v6 = vadd.f32 %v562_v11, %v1212_v63 }
 0x28e   :  { %v943_v12 = vpop.eup %942  ;;  %v704_v14 = vmul.f32 1.442695, %v678_v10  ;;  %v631_v15 = vadd.f32 1.0, %v941_v13 }
 0x28f   :  { %725 = vst [vmem:[#allocation4 + $0x48] sm:$0xff] %v943_v12  ;;  %946 = vtanh.f32 %v563_v6 }
 0x290   :  { %948 = vpow2.f32 %v704_v14  ;;  %v647_v16 = vmul.f32 10.5, %v631_v15 }
 0x292   :  { %v663_v17 = vadd.f32 -20.0, %v647_v16  ;;  %v513_v18 = vpop.f32.mrf.mxu3 }
 0x293   :  { %v945_v19 = vpop.eup %944  ;;  %v514_v20 = vadd.f32 %v513_v18, %v1215_v2 }
 0x294   :  { %v679_v21 = vmul.f32 2.0, %v663_v17  ;;  %615 = vst [vmem:[#allocation2 + $0x58] sm:$0xff] %v945_v19  ;;  %v564_v22 = vpop.f32.mrf.mxu0 }
 0x295   :  { %v947_v23 = vpop.eup %946  ;;  %950 = vtanh.f32 %v514_v20  ;;  %v565_v24 = vadd.f32 %v564_v22, %v1212_v63 }
 0x296   :  { %v949_v25 = vpop.eup %948  ;;  %v706_v26 = vmul.f32 1.442695, %v679_v21  ;;  %v632_v27 = vadd.f32 1.0, %v947_v23 }
 0x297   :  { %726 = vst [vmem:[#allocation4 + $0x50] sm:$0xff] %v949_v25  ;;  %952 = vtanh.f32 %v565_v24 }
 0x298   :  { %954 = vpow2.f32 %v706_v26  ;;  %v648_v28 = vmul.f32 10.5, %v632_v27 }
 0x29a   :  { %v664_v29 = vadd.f32 -20.0, %v648_v28  ;;  %v515_v30 = vpop.f32.mrf.mxu3 }
 0x29b   :  { %v951_v31 = vpop.eup %950  ;;  %v516_v32 = vadd.f32 %v515_v30, %v1215_v2 }
 0x29c   :  { %v680_v33 = vmul.f32 2.0, %v664_v29  ;;  %616 = vst [vmem:[#allocation2 + $0x60] sm:$0xff] %v951_v31  ;;  %v567_v34 = vpop.f32.mrf.mxu0 }
 0x29d   :  { %v953_v35 = vpop.eup %952  ;;  %956 = vtanh.f32 %v516_v32  ;;  %v568_v36 = vadd.f32 %v567_v34, %v1212_v63 }
 0x29e   :  { %v955_v37 = vpop.eup %954  ;;  %v708_v38 = vmul.f32 1.442695, %v680_v33  ;;  %v633_v39 = vadd.f32 1.0, %v953_v35 }
 0x29f   :  { %727 = vst [vmem:[#allocation4 + $0x58] sm:$0xff] %v955_v37  ;;  %958 = vtanh.f32 %v568_v36 }
 0x2a0   :  { %960 = vpow2.f32 %v708_v38  ;;  %v649_v40 = vmul.f32 10.5, %v633_v39 }
 0x2a2   :  { %v665_v41 = vadd.f32 -20.0, %v649_v40  ;;  %v518_v42 = vpop.f32.mrf.mxu3 }
 0x2a3   :  { %v957_v43 = vpop.eup %956  ;;  %v519_v44 = vadd.f32 %v518_v42, %v1215_v2 }
 0x2a4   :  { %v681_v45 = vmul.f32 2.0, %v665_v41  ;;  %617 = vst [vmem:[#allocation2 + $0x68] sm:$0xff] %v957_v43  ;;  %v569_v46 = vpop.f32.mrf.mxu0 }
 0x2a5   :  { %v959_v47 = vpop.eup %958  ;;  %962 = vtanh.f32 %v519_v44  ;;  %v570_v48 = vadd.f32 %v569_v46, %v1212_v63 }
 0x2a6   :  { %v961_v49 = vpop.eup %960  ;;  %v710_v50 = vmul.f32 1.442695, %v681_v45  ;;  %v634_v51 = vadd.f32 1.0, %v959_v47 }
 0x2a7   :  { %728 = vst [vmem:[#allocation4 + $0x60] sm:$0xff] %v961_v49  ;;  %964 = vtanh.f32 %v570_v48 }
 0x2a8   :  { %966 = vpow2.f32 %v710_v50  ;;  %v650_v52 = vmul.f32 10.5, %v634_v51 }
 0x2aa   :  { %v666_v53 = vadd.f32 -20.0, %v650_v52  ;;  %v520_v54 = vpop.f32.mrf.mxu3 }
 0x2ab   :  { %v963_v55 = vpop.eup %962  ;;  %v521_v56 = vadd.f32 %v520_v54, %v1215_v2 }
 0x2ac   :  { %v682_v57 = vmul.f32 2.0, %v666_v53  ;;  %618 = vst [vmem:[#allocation2 + $0x70] sm:$0xff] %v963_v55 }
 0x2ad   :  { %v965_v58 = vpop.eup %964  ;;  %968 = vtanh.f32 %v521_v56 }
 0x2ae   :  { %v967_v59 = vpop.eup %966  ;;  %v712_v60 = vmul.f32 1.442695, %v682_v57  ;;  %v635_v61 = vadd.f32 1.0, %v965_v58 }
 0x2af   :  { %729 = vst [vmem:[#allocation4 + $0x68] sm:$0xff] %v967_v59 }
 0x2b0   :  { %970 = vpow2.f32 %v712_v60  ;;  %v651_v63 = vmul.f32 10.5, %v635_v61 }
 0x2b2   :  { %v667_v62 = vadd.f32 -20.0, %v651_v63 }
 0x2b3   :  { %v969_v2 = vpop.eup %968 }
 0x2b4   :  { %v683_v0 = vmul.f32 2.0, %v667_v62  ;;  %619 = vst [vmem:[#allocation2 + $0x78] sm:$0xff] %v969_v2 }
 0x2b5   :  { %744 = dma.vmem_to_hbm [thread:$0]  %s737_s19, 2048, %s739_s22, [#allocation3], %s1027_s1, %s1027_s1, %s1028_s23  }
 0x2b6   :  { %v971_v1 = vpop.eup %970  ;;  %v714_v3 = vmul.f32 1.442695, %v683_v0 }
 0x2b7   :  { %730 = vst [vmem:[#allocation4 + $0x70] sm:$0xff] %v971_v1 }
 0x2b8   :  { %972 = vpow2.f32 %v714_v3 }
 0x2be   :  { %v973_v4 = vpop.eup %972 }
 0x2bf   :  { %731 = vst [vmem:[#allocation4 + $0x78] sm:$0xff] %v973_v4 }
 0x2c0   :  { %757 = dma.vmem_to_hbm [thread:$0]  %s750_s25, 2048, %s752_s27, [#allocation5], %s1027_s1, %s1027_s1, %s1028_s23  }
 0x2c1   :  { %1022 = dma.done.wait [#allocation3], 2048  }
 0x2c2   :  { %1023 = vsyncadd [#allocation3], 4294965248 }
 0x2c3   :  { %1024 = dma.done.wait [#allocation5], 2048  }
 0x2c4   :  { %1025 = vsyncadd [#allocation5], 4294965248 }
 0x2c5   :  { %766 = vsyncpa [#allocation3], 1 }
 0x2c6   :  { %767 = vsyncpa [#allocation5], 1 }

</bundles_post_ra>
